<compile_context>
chip_gen: v6e
topology: v6e:2x2x1
jax: 0.10.0
libtpu: 0.0.40
codegen_flags: <defaults>
</compile_context>

<pallas_src>
import functools

import jax
import jax.numpy as jnp
from jax import lax
from jax.experimental import pallas as pl
from jax.experimental.pallas import tpu as pltpu

BN_EPS = 1e-5


# ---------------------------------------------------------------------------
# Pass 1: tiled matmul + BN statistics accumulation (finalize scale/shift).
# ---------------------------------------------------------------------------
def _conv_stats_kernel(w_ref, p_ref, g_ref, b_ref,          # inputs
                       y_ref, scale_ref, shift_ref,         # outputs
                       sum_ref, sumsq_ref,                   # VMEM scratch
                       *, m_total):
    # w_ref:  (C, K)        conv weights, (Cin, KH, KW) flattened on K
    # p_ref:  (K, TILE_M)   im2col patch tile (lane-dense on M)
    # g_ref, b_ref:          (C, 1)  gamma / beta
    # y_ref:  (C, TILE_M)   pre-BN conv output tile
    # scale_ref, shift_ref:  (C, 1)  BN affine folded into scale/shift
    # sum_ref, sumsq_ref:    (C, 1)  resident per-channel accumulators
    i = pl.program_id(0)

    y = jnp.dot(w_ref[...], p_ref[...], preferred_element_type=jnp.float32)
    y_ref[...] = y

    @pl.when(i == 0)
    def _():
        sum_ref[...] = jnp.zeros_like(sum_ref)
        sumsq_ref[...] = jnp.zeros_like(sumsq_ref)

    # Cross-lane reductions go to the XLU (free slot relative to the VPU).
    sum_ref[...] = sum_ref[...] + jnp.sum(y, axis=-1, keepdims=True)
    sumsq_ref[...] = sumsq_ref[...] + jnp.sum(y * y, axis=-1, keepdims=True)

    @pl.when(i == pl.num_programs(0) - 1)
    def _():
        inv_m = jnp.float32(1.0 / m_total)
        mean = sum_ref[...] * inv_m
        var = sumsq_ref[...] * inv_m - mean * mean     # biased variance (BN training)
        scale = g_ref[...] * lax.rsqrt(var + BN_EPS)
        scale_ref[...] = scale
        shift_ref[...] = b_ref[...] - mean * scale


# ---------------------------------------------------------------------------
# Pass 2: normalize (embarrassingly parallel over M tiles).
# ---------------------------------------------------------------------------
def _bn_apply_kernel(y_ref, scale_ref, shift_ref, o_ref):
    o_ref[...] = y_ref[...] * scale_ref[...] + shift_ref[...]


# ---------------------------------------------------------------------------
# im2col in transposed layout: (K, M) with K = Cin*KH*KW, M = N*OH*OW.
# Feature order matches PyTorch weight.reshape(Cout, Cin*KH*KW).
# ---------------------------------------------------------------------------
def _im2col_t(x_nchw, ksize, padding, stride):
    n, cin, h, w = x_nchw.shape
    kh = kw = ksize
    oh = (h + 2 * padding - kh) // stride + 1
    ow = (w + 2 * padding - kw) // stride + 1
    xp = jnp.pad(x_nchw, ((0, 0), (0, 0), (padding, padding), (padding, padding)))

    rows = []
    for i in range(kh):
        for j in range(kw):
            sl = xp[:, :, i:i + stride * oh:stride, j:j + stride * ow:stride]
            rows.append(sl)                              # (N, Cin, OH, OW)
    pat = jnp.stack(rows, axis=0)                        # (KH*KW, N, Cin, OH, OW)
    pat = jnp.transpose(pat, (2, 0, 1, 3, 4))            # (Cin, KH*KW, N, OH, OW)
    p_km = pat.reshape(cin * kh * kw, n * oh * ow)       # (K, M)
    return p_km, (n, oh, ow)


@functools.partial(jax.jit,
                   static_argnames=("ksize", "padding", "stride", "tile_m"))
def cb_forward(x_nchw, weight, bias, gamma, beta, *,
               ksize, padding, stride, tile_m=1024):
    """Conv2d(in,out,ksize,padding,stride,bias=True) + BatchNorm2d(out) forward.

    x_nchw: (N, Cin, H, W) f32; weight: (Cout, Cin, KH, KW);
    bias/gamma/beta: (Cout,). Returns (N, Cout, OH, OW) f32.
    """
    del bias  # A per-channel constant cancels exactly under training-mode BN.

    cout = weight.shape[0]
    p_km, (n, oh, ow) = _im2col_t(x_nchw.astype(jnp.float32), ksize, padding, stride)
    k, m = p_km.shape

    # M tiling: lane-dense (multiple of 128), capped at tile_m, padded with
    # zero columns (zero patches contribute 0 to sum / sum^2, so stats stay
    # exact as long as we divide by the real M).
    m_aligned = -(-m // 128) * 128
    tile_eff = min(tile_m, m_aligned)
    m_pad = -(-m // tile_eff) * tile_eff
    num_tiles = m_pad // tile_eff
    p_km = jnp.pad(p_km, ((0, 0), (0, m_pad - m)))

    w_ck = weight.reshape(cout, k).astype(jnp.float32)      # (C, K)
    g_col = gamma.reshape(cout, 1).astype(jnp.float32)
    be_col = beta.reshape(cout, 1).astype(jnp.float32)

    # ---- pass 1: conv matmul + BN statistics ----------------------------
    y_cm, scale_col, shift_col = pl.pallas_call(
        functools.partial(_conv_stats_kernel, m_total=m),
        out_shape=(
            jax.ShapeDtypeStruct((cout, m_pad), jnp.float32),
            jax.ShapeDtypeStruct((cout, 1), jnp.float32),
            jax.ShapeDtypeStruct((cout, 1), jnp.float32),
        ),
        grid=(num_tiles,),
        in_specs=[
            pl.BlockSpec((cout, k), lambda i: (0, 0)),
            pl.BlockSpec((k, tile_eff), lambda i: (0, i)),
            pl.BlockSpec((cout, 1), lambda i: (0, 0)),
            pl.BlockSpec((cout, 1), lambda i: (0, 0)),
        ],
        out_specs=(
            pl.BlockSpec((cout, tile_eff), lambda i: (0, i)),
            pl.BlockSpec((cout, 1), lambda i: (0, 0)),
            pl.BlockSpec((cout, 1), lambda i: (0, 0)),
        ),
        scratch_shapes=[
            pltpu.VMEM((cout, 1), jnp.float32),
            pltpu.VMEM((cout, 1), jnp.float32),
        ],
        compiler_params=pltpu.CompilerParams(
            dimension_semantics=("arbitrary",)),
        cost_estimate=pl.CostEstimate(
            flops=2 * m_pad * k * cout,
            transcendentals=cout,
            bytes_accessed=4 * (m_pad * k + cout * k + 2 * cout
                                + cout * m_pad + 2 * cout)),
    )(w_ck, p_km, g_col, be_col)

    # ---- pass 2: apply normalization (parallel over M tiles) ------------
    out_cm = pl.pallas_call(
        _bn_apply_kernel,
        out_shape=jax.ShapeDtypeStruct((cout, m_pad), jnp.float32),
        grid=(num_tiles,),
        in_specs=[
            pl.BlockSpec((cout, tile_eff), lambda i: (0, i)),
            pl.BlockSpec((cout, 1), lambda i: (0, 0)),
            pl.BlockSpec((cout, 1), lambda i: (0, 0)),
        ],
        out_specs=pl.BlockSpec((cout, tile_eff), lambda i: (0, i)),
        compiler_params=pltpu.CompilerParams(
            dimension_semantics=("parallel",)),
        cost_estimate=pl.CostEstimate(
            flops=2 * cout * m_pad,
            transcendentals=0,
            bytes_accessed=4 * (2 * cout * m_pad + 2 * cout)),
    )(y_cm, scale_col, shift_col)

    # (C, M) -> (N, C, OH, OW); layout plumbing stays outside the hot loop.
    out = out_cm[:, :m].reshape(cout, n, oh, ow)
    return jnp.transpose(out, (1, 0, 2, 3))


if __name__ == "__main__":
    # Module config: CB(in_channel, out_channel, ksize, padding, stride)
    in_channel, out_channel = 4, 8
    ksize, padding, stride = 3, 1, 1
    N, H, W = 2, 16, 16

    key = jax.random.PRNGKey(0)
    kx, kw, kb, kg, kbe = jax.random.split(key, 5)

    x = jax.random.normal(kx, (N, in_channel, H, W), dtype=jnp.float32)
    weight = 0.1 * jax.random.normal(
        kw, (out_channel, in_channel, ksize, ksize), dtype=jnp.float32)
    bias = 0.1 * jax.random.normal(kb, (out_channel,), dtype=jnp.float32)
    gamma = 1.0 + 0.05 * jax.random.normal(kg, (out_channel,), dtype=jnp.float32)
    beta = 0.05 * jax.random.normal(kbe, (out_channel,), dtype=jnp.float32)

    # Small tile so the example exercises the multi-tile accumulation path
    # (M = 2*16*16 = 512 -> grid of 4 tiles of 128).
    out = cb_forward(x, weight, bias, gamma, beta,
                     ksize=ksize, padding=padding, stride=stride, tile_m=128)
    jax.block_until_ready(out)
    assert out.shape == (N, out_channel, H, W), out.shape

    # Pure-JAX reference: Conv2d(bias=True) + BatchNorm2d (training-mode stats).
    conv = lax.conv_general_dilated(
        x, weight, window_strides=(stride, stride),
        padding=((padding, padding), (padding, padding)),
        dimension_numbers=("NCHW", "OIHW", "NCHW"),
        precision=lax.Precision.HIGHEST)
    conv = conv + bias[None, :, None, None]
    mean = conv.mean(axis=(0, 2, 3), keepdims=True)
    var = conv.var(axis=(0, 2, 3), keepdims=True)          # biased variance
    ref = (conv - mean) * lax.rsqrt(var + BN_EPS) \
        * gamma[None, :, None, None] + beta[None, :, None, None]

    max_err = float(jnp.max(jnp.abs(out - ref)))
    assert max_err < 1e-3, f"max abs error {max_err}"
    print("KERNEL_OK")
</pallas_src>

<mosaic_0001>
module attributes {stable_mosaic.version = 11 : i64} {
  func.func @_bn_apply_kernel(%arg0: i32, %arg1: memref<8x128xf32, #tpu.memory_space<vmem>>, %arg2: memref<8x1xf32, #tpu.memory_space<vmem>>, %arg3: memref<8x1xf32, #tpu.memory_space<vmem>>, %arg4: memref<8x128xf32, #tpu.memory_space<vmem>>) attributes {dimension_semantics = [#tpu.dimension_semantics<parallel>], iteration_bounds = array<i64: 4>, scalar_prefetch = 0 : i64, scratch_operands = 0 : i64, tpu.core_type = #tpu.core_type<tc>, window_params = [{transform_indices = @transform_0, window_bounds = array<i64: 8, 128>}, {pipeline_mode = #tpu.pipeline_mode<synchronous>, transform_indices = @transform_1, window_bounds = array<i64: 8, 1>}, {pipeline_mode = #tpu.pipeline_mode<synchronous>, transform_indices = @transform_2, window_bounds = array<i64: 8, 1>}, {transform_indices = @transform_3, window_bounds = array<i64: 8, 128>}]} {
    %c0 = arith.constant 0 : index
    %c0_0 = arith.constant 0 : index
    %0 = vector.load %arg1[%c0, %c0_0] : memref<8x128xf32, #tpu.memory_space<vmem>>, vector<8x128xf32>
    %c0_1 = arith.constant 0 : index
    %c0_2 = arith.constant 0 : index
    %1 = vector.load %arg2[%c0_1, %c0_2] : memref<8x1xf32, #tpu.memory_space<vmem>>, vector<8x1xf32>
    %2 = vector.broadcast %1 : vector<8x1xf32> to vector<8x128xf32>
    %3 = arith.mulf %0, %2 : vector<8x128xf32>
    %c0_3 = arith.constant 0 : index
    %c0_4 = arith.constant 0 : index
    %4 = vector.load %arg3[%c0_3, %c0_4] : memref<8x1xf32, #tpu.memory_space<vmem>>, vector<8x1xf32>
    %5 = vector.broadcast %4 : vector<8x1xf32> to vector<8x128xf32>
    %6 = arith.addf %3, %5 : vector<8x128xf32>
    %c0_5 = arith.constant 0 : index
    %c0_6 = arith.constant 0 : index
    %7 = vector.load %arg4[%c0_5, %c0_6] : memref<8x128xf32, #tpu.memory_space<vmem>>, vector<8x128xf32>
    tpu.vector_store %arg4[%c0_5, %c0_6], %6 {strides = array<i32>} : memref<8x128xf32, #tpu.memory_space<vmem>>, vector<8x128xf32>,
    return
  }
  func.func @transform_0(%arg0: i32) -> (i32, i32) {
    %c0_i32 = arith.constant 0 : i32
    %c0_i32_0 = arith.constant 0 : i32
    return %c0_i32, %arg0 : i32, i32
  }
  func.func @transform_1(%arg0: i32) -> (i32, i32) {
    %c0_i32 = arith.constant 0 : i32
    %c0_i32_0 = arith.constant 0 : i32
    %c0_i32_1 = arith.constant 0 : i32
    return %c0_i32, %c0_i32_0 : i32, i32
  }
  func.func @transform_2(%arg0: i32) -> (i32, i32) {
    %c0_i32 = arith.constant 0 : i32
    %c0_i32_0 = arith.constant 0 : i32
    %c0_i32_1 = arith.constant 0 : i32
    return %c0_i32, %c0_i32_0 : i32, i32
  }
  func.func @transform_3(%arg0: i32) -> (i32, i32) {
    %c0_i32 = arith.constant 0 : i32
    %c0_i32_0 = arith.constant 0 : i32
    return %c0_i32, %arg0 : i32, i32
  }
}

module attributes {stable_mosaic.version = 11 : i64} {
  func.func @_conv_stats_kernel(%arg0: i32, %arg1: memref<8x36xf32, #tpu.memory_space<vmem>>, %arg2: memref<36x128xf32, #tpu.memory_space<vmem>>, %arg3: memref<8x1xf32, #tpu.memory_space<vmem>>, %arg4: memref<8x1xf32, #tpu.memory_space<vmem>>, %arg5: memref<8x128xf32, #tpu.memory_space<vmem>>, %arg6: memref<8x1xf32, #tpu.memory_space<vmem>>, %arg7: memref<8x1xf32, #tpu.memory_space<vmem>>, %arg8: memref<8x1xf32, #tpu.memory_space<vmem>>, %arg9: memref<8x1xf32, #tpu.memory_space<vmem>>) attributes {dimension_semantics = [#tpu.dimension_semantics<arbitrary>], iteration_bounds = array<i64: 4>, scalar_prefetch = 0 : i64, scratch_operands = 2 : i64, tpu.core_type = #tpu.core_type<tc>, window_params = [{pipeline_mode = #tpu.pipeline_mode<synchronous>, transform_indices = @transform_0, window_bounds = array<i64: 8, 36>}, {transform_indices = @transform_1, window_bounds = array<i64: 36, 128>}, {pipeline_mode = #tpu.pipeline_mode<synchronous>, transform_indices = @transform_2, window_bounds = array<i64: 8, 1>}, {pipeline_mode = #tpu.pipeline_mode<synchronous>, transform_indices = @transform_3, window_bounds = array<i64: 8, 1>}, {transform_indices = @transform_4, window_bounds = array<i64: 8, 128>}, {pipeline_mode = #tpu.pipeline_mode<synchronous>, transform_indices = @transform_5, window_bounds = array<i64: 8, 1>}, {pipeline_mode = #tpu.pipeline_mode<synchronous>, transform_indices = @transform_6, window_bounds = array<i64: 8, 1>}]} {
    %c0 = arith.constant 0 : index
    %c0_0 = arith.constant 0 : index
    %0 = vector.load %arg1[%c0, %c0_0] : memref<8x36xf32, #tpu.memory_space<vmem>>, vector<8x36xf32>
    %c0_1 = arith.constant 0 : index
    %c0_2 = arith.constant 0 : index
    %1 = vector.load %arg2[%c0_1, %c0_2] : memref<36x128xf32, #tpu.memory_space<vmem>>, vector<36x128xf32>
    %cst = arith.constant dense<0.000000e+00> : vector<8x128xf32>
    %2 = tpu.matmul %0, %1, %cst {dimension_numbers = #tpu.dot_dimension_numbers<[1], [0], [0], [1], [0, 0, 1, 1], [], []>} : vector<8x36xf32>, vector<36x128xf32>, vector<8x128xf32> -> vector<8x128xf32>
    %c0_3 = arith.constant 0 : index
    %c0_4 = arith.constant 0 : index
    %3 = vector.load %arg5[%c0_3, %c0_4] : memref<8x128xf32, #tpu.memory_space<vmem>>, vector<8x128xf32>
    tpu.vector_store %arg5[%c0_3, %c0_4], %2 {strides = array<i32>} : memref<8x128xf32, #tpu.memory_space<vmem>>, vector<8x128xf32>,
    %c0_i32 = arith.constant 0 : i32
    %4 = arith.cmpi eq, %arg0, %c0_i32 : i32
    %5 = arith.extui %4 : i1 to i32
    %c0_i32_5 = arith.constant 0 : i32
    %6 = arith.cmpi ne, %5, %c0_i32_5 : i32
    scf.if %6 {
      %cst_17 = arith.constant 0.000000e+00 : f32
      %21 = vector.broadcast %cst_17 : f32 to vector<8x1xf32>
      %c0_18 = arith.constant 0 : index
      %c0_19 = arith.constant 0 : index
      %22 = vector.load %arg8[%c0_18, %c0_19] : memref<8x1xf32, #tpu.memory_space<vmem>>, vector<8x1xf32>
      tpu.vector_store %arg8[%c0_18, %c0_19], %21 {strides = array<i32>} : memref<8x1xf32, #tpu.memory_space<vmem>>, vector<8x1xf32>,
      %cst_20 = arith.constant 0.000000e+00 : f32
      %23 = vector.broadcast %cst_20 : f32 to vector<8x1xf32>
      %c0_21 = arith.constant 0 : index
      %c0_22 = arith.constant 0 : index
      %24 = vector.load %arg9[%c0_21, %c0_22] : memref<8x1xf32, #tpu.memory_space<vmem>>, vector<8x1xf32>
      tpu.vector_store %arg9[%c0_21, %c0_22], %23 {strides = array<i32>} : memref<8x1xf32, #tpu.memory_space<vmem>>, vector<8x1xf32>,
    } else {
    }
    %c0_6 = arith.constant 0 : index
    %c0_7 = arith.constant 0 : index
    %7 = vector.load %arg8[%c0_6, %c0_7] : memref<8x1xf32, #tpu.memory_space<vmem>>, vector<8x1xf32>
    %cst_8 = arith.constant dense<0.000000e+00> : vector<8xf32>
    %8 = vector.multi_reduction <add>, %2, %cst_8 [1] : vector<8x128xf32> to vector<8xf32>
    %9 = vector.shape_cast %8 : vector<8xf32> to vector<8x1xf32>
    %10 = arith.addf %7, %9 : vector<8x1xf32>
    %c0_9 = arith.constant 0 : index
    %c0_10 = arith.constant 0 : index
    %11 = vector.load %arg8[%c0_9, %c0_10] : memref<8x1xf32, #tpu.memory_space<vmem>>, vector<8x1xf32>
    tpu.vector_store %arg8[%c0_9, %c0_10], %10 {strides = array<i32>} : memref<8x1xf32, #tpu.memory_space<vmem>>, vector<8x1xf32>,
    %c0_11 = arith.constant 0 : index
    %c0_12 = arith.constant 0 : index
    %12 = vector.load %arg9[%c0_11, %c0_12] : memref<8x1xf32, #tpu.memory_space<vmem>>, vector<8x1xf32>
    %13 = arith.mulf %2, %2 : vector<8x128xf32>
    %cst_13 = arith.constant dense<0.000000e+00> : vector<8xf32>
    %14 = vector.multi_reduction <add>, %13, %cst_13 [1] : vector<8x128xf32> to vector<8xf32>
    %15 = vector.shape_cast %14 : vector<8xf32> to vector<8x1xf32>
    %16 = arith.addf %12, %15 : vector<8x1xf32>
    %c0_14 = arith.constant 0 : index
    %c0_15 = arith.constant 0 : index
    %17 = vector.load %arg9[%c0_14, %c0_15] : memref<8x1xf32, #tpu.memory_space<vmem>>, vector<8x1xf32>
    tpu.vector_store %arg9[%c0_14, %c0_15], %16 {strides = array<i32>} : memref<8x1xf32, #tpu.memory_space<vmem>>, vector<8x1xf32>,
    %c3_i32 = arith.constant 3 : i32
    %18 = arith.cmpi eq, %arg0, %c3_i32 : i32
    %19 = arith.extui %18 : i1 to i32
    %c0_i32_16 = arith.constant 0 : i32
    %20 = arith.cmpi ne, %19, %c0_i32_16 : i32
    scf.if %20 {
      %c0_17 = arith.constant 0 : index
      %c0_18 = arith.constant 0 : index
      %21 = vector.load %arg8[%c0_17, %c0_18] : memref<8x1xf32, #tpu.memory_space<vmem>>, vector<8x1xf32>
      %cst_19 = arith.constant 0.001953125 : f32
      %22 = vector.broadcast %cst_19 : f32 to vector<8x1xf32>
      %23 = arith.mulf %21, %22 : vector<8x1xf32>
      %c0_20 = arith.constant 0 : index
      %c0_21 = arith.constant 0 : index
      %24 = vector.load %arg9[%c0_20, %c0_21] : memref<8x1xf32, #tpu.memory_space<vmem>>, vector<8x1xf32>
      %cst_22 = arith.constant 0.001953125 : f32
      %25 = vector.broadcast %cst_22 : f32 to vector<8x1xf32>
      %26 = arith.mulf %24, %25 : vector<8x1xf32>
      %27 = arith.mulf %23, %23 : vector<8x1xf32>
      %28 = arith.subf %26, %27 : vector<8x1xf32>
      %c0_23 = arith.constant 0 : index
      %c0_24 = arith.constant 0 : index
      %29 = vector.load %arg3[%c0_23, %c0_24] : memref<8x1xf32, #tpu.memory_space<vmem>>, vector<8x1xf32>
      %cst_25 = arith.constant 9.99999974E-6 : f32
      %30 = vector.broadcast %cst_25 : f32 to vector<8x1xf32>
      %31 = arith.addf %28, %30 : vector<8x1xf32>
      %32 = math.rsqrt %31 : vector<8x1xf32>
      %33 = arith.mulf %29, %32 : vector<8x1xf32>
      %c0_26 = arith.constant 0 : index
      %c0_27 = arith.constant 0 : index
      %34 = vector.load %arg6[%c0_26, %c0_27] : memref<8x1xf32, #tpu.memory_space<vmem>>, vector<8x1xf32>
      tpu.vector_store %arg6[%c0_26, %c0_27], %33 {strides = array<i32>} : memref<8x1xf32, #tpu.memory_space<vmem>>, vector<8x1xf32>,
      %c0_28 = arith.constant 0 : index
      %c0_29 = arith.constant 0 : index
      %35 = vector.load %arg4[%c0_28, %c0_29] : memref<8x1xf32, #tpu.memory_space<vmem>>, vector<8x1xf32>
      %36 = arith.mulf %23, %33 : vector<8x1xf32>
      %37 = arith.subf %35, %36 : vector<8x1xf32>
      %c0_30 = arith.constant 0 : index
      %c0_31 = arith.constant 0 : index
      %38 = vector.load %arg7[%c0_30, %c0_31] : memref<8x1xf32, #tpu.memory_space<vmem>>, vector<8x1xf32>
      tpu.vector_store %arg7[%c0_30, %c0_31], %37 {strides = array<i32>} : memref<8x1xf32, #tpu.memory_space<vmem>>, vector<8x1xf32>,
    } else {
    }
    return
  }
  func.func @transform_0(%arg0: i32) -> (i32, i32) {
    %c0_i32 = arith.constant 0 : i32
    %c0_i32_0 = arith.constant 0 : i32
    %c0_i32_1 = arith.constant 0 : i32
    return %c0_i32, %c0_i32_0 : i32, i32
  }
  func.func @transform_1(%arg0: i32) -> (i32, i32) {
    %c0_i32 = arith.constant 0 : i32
    %c0_i32_0 = arith.constant 0 : i32
    return %c0_i32, %arg0 : i32, i32
  }
  func.func @transform_2(%arg0: i32) -> (i32, i32) {
    %c0_i32 = arith.constant 0 : i32
    %c0_i32_0 = arith.constant 0 : i32
    %c0_i32_1 = arith.constant 0 : i32
    return %c0_i32, %c0_i32_0 : i32, i32
  }
  func.func @transform_3(%arg0: i32) -> (i32, i32) {
    %c0_i32 = arith.constant 0 : i32
    %c0_i32_0 = arith.constant 0 : i32
    %c0_i32_1 = arith.constant 0 : i32
    return %c0_i32, %c0_i32_0 : i32, i32
  }
  func.func @transform_4(%arg0: i32) -> (i32, i32) {
    %c0_i32 = arith.constant 0 : i32
    %c0_i32_0 = arith.constant 0 : i32
    return %c0_i32, %arg0 : i32, i32
  }
  func.func @transform_5(%arg0: i32) -> (i32, i32) {
    %c0_i32 = arith.constant 0 : i32
    %c0_i32_0 = arith.constant 0 : i32
    %c0_i32_1 = arith.constant 0 : i32
    return %c0_i32, %c0_i32_0 : i32, i32
  }
  func.func @transform_6(%arg0: i32) -> (i32, i32) {
    %c0_i32 = arith.constant 0 : i32
    %c0_i32_0 = arith.constant 0 : i32
    %c0_i32_1 = arith.constant 0 : i32
    return %c0_i32, %c0_i32_0 : i32, i32
  }
}

</mosaic_0001>

<bundles_post_ra>
// kernel: cb_forward.3
= control target key start
LH: loop header
LB: loop body
LE: loop exit
PB: predicated region body
PF: predicated region fallthrough
CT: control target
= control target key end

     0   :  { %s283_s12 = smov 0   ;;  %s300_s0 = inlined_call_operand.vmem [shape: f32[8,512], index: 0, kind: input, shape index: {}]   ;;  %s301_s1 = inlined_call_operand.vmem [shape: f32[8,1], index: 1, kind: input, shape index: {}]   ;;  %s302_s2 = inlined_call_operand.vmem [shape: f32[8,1], index: 2, kind: input, shape index: {}]   ;;  %s303_s3 = inlined_call_operand.vmem [shape: f32[8,512], index: 3, kind: output, shape index: {}]  }
   0x1 LB: > { %s235_s13 = sadd.s32 4294967295, %s260_s12   ;;  %p239_p0 = scmp.ge.s32.totalorder %s260_s12, 1  ;;  %s260_s12 = sphi %s283_s12, %s13_s12  }
   0x2   : > { %p136_p1 = scmp.lt.s32.totalorder %s260_s12, 5 }
   0x4   : > { %p137_p2 = pnand %p239_p0, %p136_p1 }
   0x5   : > { %p158_p3 = scmp.lt.s32.totalorder (!%p137_p2), %s235_s13, 3 }
   0x6   : > { %140 = sbr.rel (%p137_p2) target bundleno = 144 (0x90), region = 32 }
   0xb   : > { %v167_v0 = vld [vmem:[%s301_s1] sm:$0xff]  ;;  %v262_v1 = vmov 0   ;;  %s305_s13 = smov (!%p158_p3, %s235_s13), 3 }
   0xc   : > { %253 = vset.pattern.permute.xlu0 %v262_v1  ;;  %v174_v2 = vld [vmem:[%s302_s2] sm:$0xff]  ;;  %s240_s18 = sshll.u32 %s305_s13, 3 }
   0xd   : > { %170 = vperm.xlu0 %253, %v167_v0   ;;  %s161_s21 = scalar_lea.vmem %s300_s0, %s240_s18  ;;  %s165_s24 = scalar_lea.vmem %s303_s3, %s240_s18 }
   0xe   : > { %v166_v4 = vld [vmem:[%s161_s21] sm:$0xff] }
  0x11   : > { %177 = vperm.xlu0 %253, %v174_v2  }
  0x88   : > { %v171_v3 = vpop.permute.xlu0 %170 }
  0x89   : > { %v173_v5 = vmul.f32 %v171_v3, %v166_v4 }
  0x8c   : > { %v178_v6 = vpop.permute.xlu0 %177 }
  0x8d   : > { %v180_v7 = vadd.f32 %v178_v6, %v173_v5 }
  0x8f   : > { %181 = vst [vmem:[%s165_s24] sm:$0xff] %v180_v7 }
  0x90 PF: > { %s13_s12 = sadd.s32 1, %s260_s12  }
  0x91   : > { %p10_p4 = scmp.ge.s32.totalorder %s13_s12, 6  }
  0x93   :  { %12 = sbr.rel (!%p10_p4) target bundleno = 1 (0x1), region = 62 }

// kernel: cb_forward.2
= control target key start
LH: loop header
LB: loop body
LE: loop exit
PB: predicated region body
PF: predicated region fallthrough
CT: control target
= control target key end

     0   :  { %s615_s21 = smov 0   ;;  %s617_s22 = smov 0   ;;  %s690_s0 = inlined_call_operand.vmem [shape: f32[8,36], index: 0, kind: input, shape index: {}]   ;;  %s691_s1 = inlined_call_operand.vmem [shape: f32[36,512], index: 1, kind: input, shape index: {}]   ;;  %s692_s2 = inlined_call_operand.vmem [shape: f32[8,1], index: 2, kind: input, shape index: {}]   ;;  %s693_s3 = inlined_call_operand.vmem [shape: f32[8,1], index: 3, kind: input, shape index: {}]   ;;  %s694_s4 = inlined_call_operand.vmem [shape: f32[8,512], index: 4, kind: output, shape index: {0}]   ;;  %s695_s5 = inlined_call_operand.vmem [shape: f32[8,1], index: 5, kind: output, shape index: {1}]   ;;  %s696_s6 = inlined_call_operand.vmem [shape: f32[8,1], index: 6, kind: output, shape index: {2}]  }
   0x1   :  { %s619_s23 = smov 0  }
   0x2 LB: > { %s631_s24 = sadd.s32 4294967295, %s575_s23   ;;  %s634_s25 = sadd.s32 1, %s575_s23   ;;  %s575_s23 = sphi %s619_s23, %s699_s23   ;;  %s571_s22 = sphi %s617_s22, %s698_s22   ;;  %s567_s21 = sphi %s615_s21, %s697_s21  }
   0x3   : > { %s42_s26 = ssub.s32 %s575_s23, %s634_s25  ;;  %s45_s27 = sadd.s32 1, %s571_s22 }
   0x4   : > { %p43_p0 = scmp.eq.s32.totalorder %s42_s26, 0  ;;  %p52_p1 = scmp.ne.s32.totalorder %s571_s22, %s567_s21 }
   0x5   : > { %p53_p2 = scmp.eq.s32.totalorder %s575_s23, 0  ;;  %p493_p4 = scmp.ge.s32.totalorder %s575_s23, 4 }
   0x6   : > { %s643_s28 = scalar_select %p43_p0, %s571_s22, %s45_s27  }
   0x7   : > { %p54_p3 = por %p53_p2, %p52_p1  ;;  %197 = sbr.rel (%p493_p4) target bundleno = 21 (0x15), region = 28 }
   0xc   : > { %200 = sbr.rel (!%p54_p3) target bundleno = 21 (0x15), region = 32  ;;  %s202_s29 = sand.u32 (%p54_p3), 1, %s571_s22  }
   0xd   : > { %s494_s30 = sshll.u32 (%p54_p3), %s575_s23, 3  ;;  %s522_s7 = smul.u32 (%p54_p3), 40, %s202_s29 }
   0xe   : > { %s206_s10 = scalar_lea.vmem (%p54_p3), %s691_s1, %s494_s30 }
   0xf   : > { %v243_v0 = vld [vmem:[%s206_s10] sm:$0xff] (%p54_p3)  ;;  %s204_s11 = scalar_lea.vmem (%p54_p3), [#allocation4], %s522_s7 }
  0x10   : > { %v245_v1 = vld [vmem:[%s206_s10 + $0x20] sm:$0xff] (%p54_p3)  ;;  %244 = vst [vmem:[%s204_s11] sm:$0xff] (%p54_p3), %v243_v0 }
  0x11   : > { %v247_v2 = vld [vmem:[%s206_s10 + $0x40] sm:$0xff]  ;;  %246 = vst [vmem:[%s204_s11 + $0x8] sm:$0xff] %v245_v1 }
  0x12   : > { %v249_v3 = vld [vmem:[%s206_s10 + $0x60] sm:$0xff]  ;;  %248 = vst [vmem:[%s204_s11 + $0x10] sm:$0xff] %v247_v2 }
  0x13   : > { %v251_v4 = vld [vmem:[%s206_s10 + $0x80] sm:$0xff]  ;;  %250 = vst [vmem:[%s204_s11 + $0x18] sm:$0xff] %v249_v3 }
  0x14   : > { %252 = vst [vmem:[%s204_s11 + $0x20] sm:$0xff] %v251_v4 }
  0x15 PF: > { %p495_p5 = scmp.ge.s32.totalorder %s575_s23, 1  ;;  %p257_p6 = scmp.lt.s32.totalorder %s575_s23, 5 }
  0x17   : > { %p258_p7 = pnand %p495_p5, %p257_p6 }
  0x18   : > { %s264_s12 = sand.u32 (!%p258_p7), 1, %s567_s21   ;;  %p292_p8 = scmp.lt.s32.totalorder (!%p258_p7), %s631_s24, 3 }
  0x19   : > { %261 = sbr.rel (%p258_p7) target bundleno = 417 (0x1a1), region = 70  ;;  %p499_p9 = scmp.ne.s32.totalorder (!%p258_p7), %s631_s24, 0 }
  0x1a   : > { %s523_s13 = smul.u32 (!%p258_p7), 40, %s264_s12 }
  0x1c   : > { %s266_s14 = scalar_lea.vmem (!%p258_p7), [#allocation4], %s523_s13 }
  0x1e   : > { %v577_v5 = vmov 0.0   ;;  %vm578_vm0 = vmmov 0   ;;  %vm306_vm1 = vcmask 1043456   ;;  %v301_v6 = vld [vmem:[%s266_s14 + $0x20] sm:$0xf]  ;;  %v300_v7 = vld [vmem:[%s266_s14 + $0x18] sm:$0xff] }
  0x1f   : > { %509 = vmatprep.subr.mxu0 %v577_v5  ;;  %519 = vmatprep.mubr.msk.f32.mxu0 %vm578_vm0, %v577_v5  ;;  %v299_v8 = vld [vmem:[%s266_s14 + $0x10] sm:$0xff]  ;;  %v298_v9 = vld [vmem:[%s266_s14 + $0x8] sm:$0xff]  ;;  %v297_v10 = vld [vmem:[%s266_s14] sm:$0xff]  ;;  %vm302_vm2 = vcmask 293888   ;;  %s293_s17 = scalar_select %p292_p8, %s631_s24, 3 }
  0x20   : > { %510 = vmatpush3.msk.msra.mxu0 %vm306_vm1, %v301_v6  ;;  %v296_v11 = vld [vmem:[%s690_s0] sm:$0xff] }
  0x21   : > { %511 = vmatprep.subr.mxu0 %v577_v5  ;;  %s496_s18 = sshll.u32 %s293_s17, 3 }
  0x22   : > { %512 = vmatpush3.msra.mxu0 %v300_v7  ;;  %s295_s21 = scalar_lea.vmem %s694_s4, %s496_s18 }
  0x23   : > { %513 = vmatprep.subr.mxu0 %v577_v5 }
  0x24   : > { %514 = vmatpush3.msra.mxu0 %v299_v8 }
  0x25   : > { %515 = vmatprep.subr.mxu0 %v577_v5 }
  0x26   : > { %516 = vmatpush3.msra.mxu0 %v298_v9 }
  0x27   : > { %517 = vmatprep.subr.mxu0 %v577_v5 }
  0x28   : > { %518 = vmatpush3.msra.mxu0 %v297_v10 }
  0x29   : > { %520 = vmatmul.mubr.msk.f32.vlgmr.msra.gmra.mxu0 %vm302_vm2, %v296_v11 }
  0xe7   : > { %384 = sbr.rel (%p499_p9) target bundleno = 238 (0xee), region = 78 }
  0xe9   : > { %v376_v12 = vpop.f32.mrf.mxu0 }
  0xea   : > { %380 = vst [vmem:[%s295_s21] sm:$0xff] %v376_v12 }
  0xeb   : > { %v521_v13 = vpop.f32.mrf.mxu0 }
  0xec   : > { %vm385_vm3 = vcmask 7168   ;;  %v579_v14 = vmov 0.0  }
  0xed   : > { %386 = vst.msk [vmem:[#allocation2] sm:$0xff] %vm385_vm3, %v579_v14  ;;  %387 = vst.msk [vmem:[#allocation3] sm:$0xff] %vm385_vm3, %v579_v14 }
  0xee PF: > { %389 = vadd.xlane.f32.xlu0 %v376_v12  ;;  %v395_v15 = vmul.f32 %v376_v12, %v376_v12  ;;  %vm392_vm4 = vcmask 7168   ;;  %p500_p10 = scmp.ne.s32.totalorder %s631_s24, 3 }
  0xf2   : > { %396 = vadd.xlane.f32.xlu0 %v395_v15 }
  0xf4   : > { %v388_v16 = vld [vmem:[#allocation2] sm:$0xff]  ;;  %v394_v19 = vld [vmem:[#allocation3] sm:$0xff] }
 0x177   : > { %v390_v17 = vpop.xlane.xlu0 %389 }
 0x178   : > { %v391_v18 = vadd.f32 %v390_v17, %v388_v16 }
 0x17a   : > { %393 = vst.msk [vmem:[#allocation2] sm:$0xff] %vm392_vm4, %v391_v18  ;;  %403 = sbr.rel (%p500_p10) target bundleno = 417 (0x1a1), region = 82 }
 0x17b   : > { %v397_v20 = vpop.xlane.xlu0 %396 }
 0x17c   : > { %v398_v21 = vadd.f32 %v397_v20, %v394_v19 }
 0x17e   : > { %399 = vst.msk [vmem:[#allocation3] sm:$0xff] %vm392_vm4, %v398_v21 }
 0x17f   : > { %v410_v29 = vld [vmem:[%s692_s2] sm:$0xff] }
 0x180   : > { %v415_v32 = vld [vmem:[%s693_s3] sm:$0xff] }
 0x181   : > { %v404_v22 = vld [vmem:[#allocation2] sm:$0xff] }
 0x182   : > { %v405_v24 = vmul.f32 0.001953125, %v404_v22 }
 0x184   : > { %v408_v26 = vmul.f32 %v405_v24, %v405_v24 }
 0x185   : > { %v406_v23 = vld [vmem:[#allocation3] sm:$0xff] }
 0x186   : > { %v407_v25 = vmul.f32 0.001953125, %v406_v23 }
 0x188   : > { %v409_v27 = vsub.f32 %v407_v25, %v408_v26 }
 0x18a   : > { %v411_v28 = vadd.f32 1e-05, %v409_v27 }
 0x18c   : > { %551 = vrsqrt.f32 %v411_v28 }
 0x199   : > { %v552_v30 = vpop.eup %551 }
 0x19a   : > { %v413_v31 = vmul.f32 %v552_v30, %v410_v29 }
 0x19c   : > { %414 = vst.msk [vmem:[%s695_s5] sm:$0xff] %vm392_vm4, %v413_v31  ;;  %v416_v33 = vmul.f32 %v413_v31, %v405_v24 }
 0x19e   : > { %v417_v34 = vsub.f32 %v415_v32, %v416_v33 }
 0x1a0   : > { %418 = vst.msk [vmem:[%s696_s6] sm:$0xff] %vm392_vm4, %v417_v34 }
 0x1a1 PF: > { %p14_p11 = scmp.ge.s32.totalorder %s634_s25, 6   ;;  %s697_s21 = smov %s571_s22 }
 0x1a2   : > { %s698_s22 = smov %s643_s28  ;;  %s699_s23 = smov %s634_s25 }
 0x1a3   :  { %16 = sbr.rel (!%p14_p11) target bundleno = 2 (0x2), region = 133 }

</bundles_post_ra>
